<compile_context>
chip_gen: v5e
topology: v5e:2x2
jax: 0.10.0
libtpu: 0.0.40
codegen_flags: <defaults>
</compile_context>

<pallas_src>
import functools

import jax
import jax.numpy as jnp
from jax import lax
from jax.experimental import pallas as pl
from jax.experimental.pallas import tpu as pltpu


# --------------------------------------------------------------------------- #
# Kernel 1: global spatial sum.  grid = (N, HW_chunks); the pooled accumulator #
# block is revisited across the HW axis ("arbitrary") and written back once    #
# per sample.                                                                  #
# --------------------------------------------------------------------------- #
def _pool_reduce_kernel(x_ref, acc_ref, *, hw, chunk):
    # x_ref:   (1, Cin, chunk)  current spatial chunk of one sample
    # acc_ref: (1, Cin, 1)      f32 running sum (same block for every chunk)
    k = pl.program_id(1)

    @pl.when(k == 0)
    def _init():
        acc_ref[...] = jnp.zeros_like(acc_ref)

    x = x_ref[...]
    if hw % chunk != 0:
        # Ragged last chunk: lanes past HW hold unspecified data -> mask them.
        col = lax.broadcasted_iota(jnp.int32, x.shape, dimension=2)
        x = jnp.where(k * chunk + col < hw, x, jnp.zeros_like(x))
    acc_ref[...] += jnp.sum(x, axis=-1, keepdims=True, dtype=jnp.float32)


# --------------------------------------------------------------------------- #
# Kernel 2: mean -> 1x1 conv (MXU matvec) -> constant broadcast over H*W.      #
# Stateless per step, so both grid axes are "parallel" (megacore-friendly,     #
# including splitting the output stream across TCs when N == 1 on v7x).        #
# --------------------------------------------------------------------------- #
def _conv_broadcast_kernel(pooled_ref, w_ref, b_ref, o_ref, *, inv_hw):
    # pooled_ref: (1, Cin, 1)  f32 spatial sums
    # w_ref:      (Cout, Cin)  conv 1x1 weight, native layout
    # b_ref:      (Cout, 1)    f32 conv bias
    # o_ref:      (1, Cout, chunk)
    mean = pooled_ref[0] * inv_hw                                        # (Cin, 1) f32
    y = jnp.dot(w_ref[...], mean, preferred_element_type=jnp.float32)    # (Cout, 1)
    y = y + b_ref[...]
    # Bilinear upsample of a 1x1 map (align_corners=True) == constant broadcast.
    o_ref[...] = jnp.broadcast_to(y[None], o_ref.shape).astype(o_ref.dtype)


def _usable_vmem_bytes():
    """Physical VMEM of this generation minus ~25% headroom for compiler scratch."""
    cap = 64 << 20  # conservative default (v7x per-core VMEM)
    try:
        info = pltpu.get_tpu_info()
        cap = int(getattr(info, "vmem_capacity_bytes", cap))
    except Exception:
        pass
    return (cap * 3) // 4


def _pick_hw_chunk(hw, rows, itemsize, target_bytes):
    """Spatial chunk: full HW if it fits the target, else a multiple of 128."""
    if hw <= 128 or rows * hw * itemsize <= target_bytes:
        return hw
    chunk = max(128, (target_bytes // (rows * itemsize)) // 128 * 128)
    return hw if chunk >= hw else chunk


def image_pool(x, weight, bias, *, target_block_bytes=None):
    """x: (N, Cin, H, W); weight: (Cout, Cin, 1, 1); bias: (Cout,)."""
    N, Cin, H, W = x.shape
    Cout = weight.shape[0]
    HW = H * W

    x_flat = x.reshape(N, Cin, HW)           # contiguous reshape: no HBM copy
    w2d = weight.reshape(Cout, Cin)          # native layout: no transpose pass
    b_col = bias.reshape(Cout, 1).astype(jnp.float32)

    usable = _usable_vmem_bytes()
    if target_block_bytes is None:
        target_block_bytes = max(1 << 20, min(16 << 20, usable // 8))

    x_item = jnp.dtype(x.dtype).itemsize
    o_item = x_item
    w_item = jnp.dtype(w2d.dtype).itemsize

    chunk_in = _pick_hw_chunk(HW, Cin, x_item, target_block_bytes)
    chunk_out = _pick_hw_chunk(HW, Cout, o_item, target_block_bytes)
    n_in = pl.cdiv(HW, chunk_in)
    n_out = pl.cdiv(HW, chunk_out)

    # VMEM need: double-buffered streaming block + resident small operands + slack.
    slack = 4 << 20
    vmem1 = int(min(usable,
                    max(2 * Cin * chunk_in * x_item + 2 * Cin * 4 + slack, 16 << 20)))
    vmem2 = int(min(usable,
                    max(2 * Cout * chunk_out * o_item
                        + 2 * (Cin * 4 + Cout * Cin * w_item + Cout * 4) + slack,
                        16 << 20)))

    # ---- pass 1: pooled spatial sums, (N, Cin, 1) f32 ----
    pooled = pl.pallas_call(
        functools.partial(_pool_reduce_kernel, hw=HW, chunk=chunk_in),
        out_shape=jax.ShapeDtypeStruct((N, Cin, 1), jnp.float32),
        grid_spec=pltpu.PrefetchScalarGridSpec(
            num_scalar_prefetch=0,
            grid=(N, n_in),
            in_specs=[pl.BlockSpec((1, Cin, chunk_in), lambda b, k: (b, 0, k))],
            out_specs=pl.BlockSpec((1, Cin, 1), lambda b, k: (b, 0, 0)),
        ),
        compiler_params=pltpu.CompilerParams(
            dimension_semantics=("parallel", "arbitrary"),
            vmem_limit_bytes=vmem1,
        ),
    )(x_flat)

    # ---- pass 2: 1x1 conv on the mean + broadcast to (H, W) ----
    out_flat = pl.pallas_call(
        functools.partial(_conv_broadcast_kernel, inv_hw=1.0 / HW),
        out_shape=jax.ShapeDtypeStruct((N, Cout, HW), x.dtype),
        grid_spec=pltpu.PrefetchScalarGridSpec(
            num_scalar_prefetch=0,
            grid=(N, n_out),
            in_specs=[
                pl.BlockSpec((1, Cin, 1), lambda b, k: (b, 0, 0)),
                pl.BlockSpec((Cout, Cin), lambda b, k: (0, 0)),
                pl.BlockSpec((Cout, 1), lambda b, k: (0, 0)),
            ],
            out_specs=pl.BlockSpec((1, Cout, chunk_out), lambda b, k: (b, 0, k)),
        ),
        compiler_params=pltpu.CompilerParams(
            dimension_semantics=("parallel", "parallel"),
            vmem_limit_bytes=vmem2,
        ),
    )(pooled, w2d, b_col)

    return out_flat.reshape(N, Cout, H, W)


def image_pool_ref(x, weight, bias):
    """Pure-JAX reference mirroring the PyTorch forward."""
    pooled = jnp.mean(x, axis=(2, 3))                             # (N, Cin)
    w2d = weight.reshape(weight.shape[0], weight.shape[1])        # (Cout, Cin)
    y = pooled @ w2d.T + bias[None, :]                            # (N, Cout)
    return jnp.broadcast_to(y[:, :, None, None],
                            (x.shape[0], weight.shape[0], x.shape[2], x.shape[3]))


if __name__ == "__main__":
    key = jax.random.PRNGKey(0)
    kx, kw, kb = jax.random.split(key, 3)

    # Main test: small shapes consistent with the module.
    N, Cin, Cout, H, W = 2, 4, 8, 16, 16
    x = jax.random.normal(kx, (N, Cin, H, W), dtype=jnp.float32)
    weight = jax.random.normal(kw, (Cout, Cin, 1, 1), dtype=jnp.float32) * 0.1
    bias = jax.random.normal(kb, (Cout,), dtype=jnp.float32) * 0.1

    out = jax.block_until_ready(image_pool(x, weight, bias))
    ref = image_pool_ref(x, weight, bias)
    assert out.shape == (N, Cout, H, W)
    assert jnp.allclose(out, ref, atol=1e-5, rtol=1e-5), "mismatch vs reference"

    # Second test: non-128-multiple spatial size + tiny block budget to exercise
    # the HW-chunked path with a ragged, masked tail chunk.
    H2 = W2 = 13
    x2 = jax.random.normal(kx, (1, Cin, H2, W2), dtype=jnp.float32)
    out2 = jax.block_until_ready(image_pool(x2, weight, bias, target_block_bytes=1024))
    ref2 = image_pool_ref(x2, weight, bias)
    assert out2.shape == (1, Cout, H2, W2)
    assert jnp.allclose(out2, ref2, atol=1e-5, rtol=1e-5), "mismatch (chunked path)"

    print("KERNEL_OK")
</pallas_src>

<mosaic_0001>
module attributes {stable_mosaic.version = 11 : i64} {
  func.func @_pool_reduce_kernel(%arg0: i32, %arg1: i32, %arg2: memref<1x4x256xf32, #tpu.memory_space<vmem>>, %arg3: memref<1x4x1xf32, #tpu.memory_space<vmem>>) attributes {dimension_semantics = [#tpu.dimension_semantics<parallel>, #tpu.dimension_semantics<arbitrary>], iteration_bounds = array<i64: 2, 1>, scalar_prefetch = 0 : i64, scratch_operands = 0 : i64, tpu.core_type = #tpu.core_type<tc>, window_params = [{transform_indices = @transform_0, window_bounds = array<i64: 1, 4, 256>}, {transform_indices = @transform_1, window_bounds = array<i64: 1, 4, 1>}]} {
    %c0_i32 = arith.constant 0 : i32
    %0 = arith.cmpi eq, %arg1, %c0_i32 : i32
    %1 = arith.extui %0 : i1 to i32
    %c0_i32_0 = arith.constant 0 : i32
    %2 = arith.cmpi ne, %1, %c0_i32_0 : i32
    scf.if %2 {
      %cst_9 = arith.constant 0.000000e+00 : f32
      %9 = vector.broadcast %cst_9 : f32 to vector<1x4x1xf32>
      %c0_10 = arith.constant 0 : index
      %c0_11 = arith.constant 0 : index
      %c0_12 = arith.constant 0 : index
      %10 = vector.load %arg3[%c0_10, %c0_11, %c0_12] : memref<1x4x1xf32, #tpu.memory_space<vmem>>, vector<1x4x1xf32>
      tpu.vector_store %arg3[%c0_10, %c0_11, %c0_12], %9 {strides = array<i32>} : memref<1x4x1xf32, #tpu.memory_space<vmem>>, vector<1x4x1xf32>,
    } else {
    }
    %c0 = arith.constant 0 : index
    %c0_1 = arith.constant 0 : index
    %c0_2 = arith.constant 0 : index
    %3 = vector.load %arg2[%c0, %c0_1, %c0_2] : memref<1x4x256xf32, #tpu.memory_space<vmem>>, vector<1x4x256xf32>
    %c0_3 = arith.constant 0 : index
    %c0_4 = arith.constant 0 : index
    %c0_5 = arith.constant 0 : index
    %4 = vector.load %arg3[%c0_3, %c0_4, %c0_5] : memref<1x4x1xf32, #tpu.memory_space<vmem>>, vector<1x4x1xf32>
    %cst = arith.constant dense<0.000000e+00> : vector<1x4xf32>
    %5 = vector.multi_reduction <add>, %3, %cst [2] : vector<1x4x256xf32> to vector<1x4xf32>
    %6 = vector.shape_cast %5 : vector<1x4xf32> to vector<1x4x1xf32>
    %7 = arith.addf %4, %6 : vector<1x4x1xf32>
    %c0_6 = arith.constant 0 : index
    %c0_7 = arith.constant 0 : index
    %c0_8 = arith.constant 0 : index
    %8 = vector.load %arg3[%c0_6, %c0_7, %c0_8] : memref<1x4x1xf32, #tpu.memory_space<vmem>>, vector<1x4x1xf32>
    tpu.vector_store %arg3[%c0_6, %c0_7, %c0_8], %7 {strides = array<i32>} : memref<1x4x1xf32, #tpu.memory_space<vmem>>, vector<1x4x1xf32>,
    return
  }
  func.func @transform_0(%arg0: i32, %arg1: i32) -> (i32, i32, i32) {
    %c0_i32 = arith.constant 0 : i32
    %c0_i32_0 = arith.constant 0 : i32
    return %arg0, %c0_i32, %arg1 : i32, i32, i32
  }
  func.func @transform_1(%arg0: i32, %arg1: i32) -> (i32, i32, i32) {
    %c0_i32 = arith.constant 0 : i32
    %c0_i32_0 = arith.constant 0 : i32
    %c0_i32_1 = arith.constant 0 : i32
    return %arg0, %c0_i32, %c0_i32_0 : i32, i32, i32
  }
}

</mosaic_0001>

<bundles_post_ra>
// kernel: tpu_custom_call.1
= control target key start
LH: loop header
LB: loop body
LE: loop exit
PB: predicated region body
PF: predicated region fallthrough
CT: control target
= control target key end

     0   :  { %6 = vsyncpa [#allocation3], 0  ;;  %s503_s0 = inlined_call_operand.hbm [shape: f32[2,4,256], index: 0, kind: input, shape index: {}]   ;;  %s504_s1 = inlined_call_operand.vmem [shape: f32[2,4,1], index: 1, kind: output, shape index: {}]  }
   0x1   :  { %8 = vsyncpa [#allocation3 + $0x1], 0  ;;  %s413_s6 = smov 0   ;;  %s415_s7 = smov 0  }
   0x2   :  { %s417_s8 = smov 0   ;;  %s419_s9 = smov 0  }
   0x3   :  { %s421_s10 = smov 0   ;;  %s423_s11 = smov 0  }
   0x4 LB: > { %s251_s12 = sadd.s32 4294967295, %s400_s11   ;;  %s26_s13 = sadd.s32 1, %s396_s10  ;;  %s400_s11 = sphi %s423_s11, %s14_s11   ;;  %s396_s10 = sphi %s421_s10, %s511_s10   ;;  %s392_s9 = sphi %s419_s9, %s510_s9   ;;  %s388_s8 = sphi %s417_s8, %s509_s8   ;;  %s384_s7 = sphi %s415_s7, %s508_s7   ;;  %s380_s6 = sphi %s413_s6, %s507_s6  }
   0x5   : > { %p28_p0 = scmp.ge.s32.totalorder %s26_s13, 2  ;;  %s35_s14 = sadd.s32 1, %s388_s8 }
   0x6   : > { %p42_p1 = scmp.ne.s32.totalorder %s388_s8, %s384_s7  ;;  %p43_p2 = scmp.eq.s32.totalorder %s400_s11, 0 }
   0x7   : > { %s513_s13 = smov (%p28_p0, %s26_s13), 0  ;;  %p48_p4 = scmp.ne.s32.totalorder %s384_s7, %s380_s6 }
   0x8   : > { %p449_p3 = por %p43_p2, %p42_p1  ;;  %s30_s16 = ssub.s32 %s396_s10, %s513_s13 }
   0x9   : > { %p49_p5 = scmp.eq.s32.totalorder %s251_s12, 0  ;;  %p33_p6 = scmp.eq.s32.totalorder %s30_s16, 0 }
   0xa   : > { %p270_p8 = scmp.lt.s32.totalorder %s400_s11, 2  ;;  %s98_s19 = sand.u32 1, %s388_s8  }
   0xb   : > { %p456_p7 = por %p49_p5, %p48_p4  ;;  %s263_s20 = sshll.u32 %s396_s10, 3 }
   0xc   : > { %s462_s18 = scalar_select %p33_p6, %s388_s8, %s35_s14  }
   0xd   : > { %s255_s21 = sshll.u32 %s98_s19, 3  ;;  %s109_s24 = scalar_lea.hbm %s503_s0, %s263_s20 }
   0xe   : > { %s111_s25 = sshll.u32 %s109_s24, 4  ;;  %s102_s26 = scalar_lea.vmem [#allocation2], %s255_s21  ;;  %s112_s25 = int_to_ptr.hbm [resolvable:$true] %s111_s25 }
   0xf   : > { %s113_s27 = sshll.u32 %s102_s26, 4  ;;  %p267_p9 = pnand %p270_p8, %p449_p3  ;;  %s114_s27 = int_to_ptr.vmem [resolvable:$true] %s113_s27 }
  0x10   : > { %p258_p10 = scmp.ge.s32.totalorder %s400_s11, 1  ;;  %p118_p11 = scmp.lt.s32.totalorder %s400_s11, 3 }
  0x11   : > { %s99_s28 = scalar_lea.sflag [#allocation3], %s98_s19 }
  0x12   : > { %269 = dma.hbm_to_vmem [thread:$0]  (!%p267_p9), %s112_s25, 128, %s114_s27, %s99_s28  }
  0x13   : > { %p119_p12 = pnand %p258_p10, %p118_p11 }
  0x14   : > { %s124_s29 = sand.u32 (!%p119_p12), 1, %s384_s7  }
  0x15   : > { %122 = sbr.rel (%p119_p12) target bundleno = 158 (0x9e), region = 24  ;;  %s259_s30 = sshll.u32 (!%p119_p12), %s124_s29, 3 }
  0x16   : > { %s125_s2 = scalar_lea.sflag (!%p119_p12), [#allocation3], %s124_s29  ;;  %s128_s3 = scalar_lea.vmem (!%p119_p12), [#allocation2], %s259_s30 }
  0x1a   : > { %375 = dma.done.wait (%p456_p7), %s125_s2, 128  }
  0x1b   : > { %377 = vsyncadd (%p456_p7), %s125_s2, 4294967168  ;;  %p148_p13 = scmp.lt.s32.totalorder %s392_s9, 1  ;;  %vm156_vm0 = vcmask 3072   ;;  %v402_v0 = vmov 0.0   ;;  %v158_v1 = vld [vmem:[%s128_s3] sm:$0xff]  ;;  %vm166_vm1 = vcmask 1043456  }
  0x1c   : > { %161 = vst [vmem:[#allocation1] ss:$2 sm:$0xff] %v158_v1 }
  0x1d   : > { %s515_s9 = smov (!%p148_p13, %s392_s9), 1 }
  0x1e   : > { %s260_s4 = sshll.u32 %s515_s9, 2 }
  0x1f   : > { %s151_s12 = scalar_lea.vmem %s504_s1, %s260_s4 }
  0x20   : > { %157 = vst.msk [vmem:[%s151_s12] sm:$0xf] %vm156_vm0, %v402_v0 }
  0x23   : > { %v162_v2 = vld.sshfl [vmem:[#allocation1] sm:$0xff pattern:$0x75316420]  ;;  %v163_v3 = vld.sshfl [vmem:[#allocation1 + $0x8] sm:$0xff pattern:$0x75316420] }
  0x24   : > { %v167_v4 = vsel %vm166_vm1, %v162_v2, 0.0  ;;  %v168_v5 = vsel %vm166_vm1, %v163_v3, 0.0 }
  0x25   : > { %v169_v6 = vadd.f32 %v168_v5, %v167_v4 }
  0x27   : > { %170 = vadd.xlane.f32.xlu0 %v169_v6  ;;  %v159_v7 = vld [vmem:[%s151_s12] sm:$0xf] }
  0x9a   : > { %v171_v8 = vpop.xlane.xlu0 %170 }
  0x9b   : > { %v172_v9 = vadd.f32 %v171_v8, %v159_v7 }
  0x9d   : > { %174 = vst.msk [vmem:[%s151_s12] sm:$0xf] %vm156_vm0, %v172_v9 }
  0x9e PF: > { %s14_s11 = sadd.s32 1, %s400_s11   ;;  %s507_s6 = smov %s384_s7 }
  0x9f   : > { %p11_p0 = scmp.ge.s32.totalorder %s14_s11, 4   ;;  %s508_s7 = smov %s388_s8 }
  0xa0   : > { %s509_s8 = smov %s462_s18  ;;  %s510_s9 = smov %s396_s10 }
  0xa1   : > { %s511_s10 = smov %s513_s13  ;;  %13 = sbr.rel (!%p11_p0) target bundleno = 4 (0x4), region = 68 }
  0xa6   :  { %194 = vsyncpa [#allocation3], 1 }
  0xa7   :  { %196 = vsyncpa [#allocation3 + $0x1], 1 }

</bundles_post_ra>
